<compile_context>
chip_gen: v6e
topology: v6e:2x2x1
jax: 0.10.0
libtpu: 0.0.40
codegen_flags: <defaults>
</compile_context>

<pallas_src>
import functools

import jax
import jax.numpy as jnp
from jax.experimental import pallas as pl
from jax.experimental.pallas import tpu as pltpu


def _round_up(a, b):
    return ((a + b - 1) // b) * b


def decoder_kernel(y_dim, compute_dtype,
                   x_ref, r_ref, z_ref,
                   w1x_ref, w1r_ref, w1z_ref, b1_ref,
                   w2_ref, b2_ref,
                   w3_ref, b3_ref,
                   wh_ref, bh_ref,
                   out_ref):
    """One row tile of the decoder MLP.

    Layer 1 is computed as three partial matmuls (x/r/z blocks of W1) summed,
    which is mathematically identical to concatenating the features first.
    The mu/sigma heads are fused into a single (h_dim, 2*y_dim) matmul; the
    sigma transform is applied via a lane mask on the combined result.
    """
    f32 = jnp.float32

    h = (jnp.dot(x_ref[...], w1x_ref[...], preferred_element_type=f32)
         + jnp.dot(r_ref[...], w1r_ref[...], preferred_element_type=f32)
         + jnp.dot(z_ref[...], w1z_ref[...], preferred_element_type=f32)
         + b1_ref[...])
    h = jnp.maximum(h, 0.0).astype(compute_dtype)

    h = jnp.dot(h, w2_ref[...], preferred_element_type=f32) + b2_ref[...]
    h = jnp.maximum(h, 0.0).astype(compute_dtype)

    h = jnp.dot(h, w3_ref[...], preferred_element_type=f32) + b3_ref[...]
    h = jnp.maximum(h, 0.0).astype(compute_dtype)

    heads = jnp.dot(h, wh_ref[...], preferred_element_type=f32) + bh_ref[...]

    # Lanes [0, y_dim) are mu; lanes [y_dim, 2*y_dim) are pre_sigma.
    col = jax.lax.broadcasted_iota(jnp.int32, heads.shape, dimension=1)
    sigma = 0.1 + 0.9 * jnp.logaddexp(heads, 0.0)      # stable softplus (EUP)
    out_ref[...] = jnp.where(col >= y_dim, sigma, heads).astype(out_ref.dtype)


def init_decoder_params(key, x_dim, r_dim, z_dim, h_dim, y_dim, dtype=jnp.float32):
    """Deterministic synthetic parameters. Weights stored as (in, out)."""
    d_in = x_dim + r_dim + z_dim
    dims = [(d_in, h_dim), (h_dim, h_dim), (h_dim, h_dim), (h_dim, y_dim), (h_dim, y_dim)]
    names = ["l1", "l2", "l3", "mu", "sigma"]
    params = {}
    for name, (fan_in, fan_out) in zip(names, dims):
        key, wk, bk = jax.random.split(key, 3)
        scale = 1.0 / jnp.sqrt(jnp.asarray(fan_in, dtype))
        params[f"w_{name}"] = jax.random.normal(wk, (fan_in, fan_out), dtype) * scale
        params[f"b_{name}"] = jax.random.normal(bk, (fan_out,), dtype) * scale
    return params


@functools.partial(jax.jit, static_argnames=("tile_m", "use_bf16"))
def decoder_forward(x, r, z, params, tile_m=1024, use_bf16=False):
    """
    x : (B, N, x_dim), r : (B, N, r_dim), z : (B, z_dim)
    Returns (mu, sigma), each (B, N, y_dim) -- the Normal(mu, sigma) parameters.
    """
    B, N, x_dim = x.shape
    r_dim = r.shape[-1]
    z_dim = z.shape[-1]
    y_dim = params["w_mu"].shape[1]
    M = B * N

    # Row-flattened inputs (reshapes of x/r are views; z_rep is small).
    x_flat = x.reshape(M, x_dim)
    r_flat = r.reshape(M, r_dim)
    z_flat = jnp.broadcast_to(z[:, None, :], (B, N, z_dim)).reshape(M, z_dim)

    # Split W1 by input block: [x|r|z] @ W1 == x@W1x + r@W1r + z@W1z.
    w1 = params["w_l1"]
    w1x = w1[:x_dim]
    w1r = w1[x_dim:x_dim + r_dim]
    w1z = w1[x_dim + r_dim:]
    w2, w3 = params["w_l2"], params["w_l3"]
    # Fused mu/sigma head -> one (h_dim, 2*y_dim) matmul, one combined output.
    wh = jnp.concatenate([params["w_mu"], params["w_sigma"]], axis=1)
    bh = jnp.concatenate([params["b_mu"], params["b_sigma"]], axis=0).reshape(1, -1)
    # 2-D (1, F) biases: single sublane row, clean VPU broadcast.
    b1 = params["b_l1"].reshape(1, -1)
    b2 = params["b_l2"].reshape(1, -1)
    b3 = params["b_l3"].reshape(1, -1)

    compute_dtype = jnp.bfloat16 if use_bf16 else jnp.float32
    if use_bf16:
        x_flat, r_flat, z_flat = (a.astype(jnp.bfloat16) for a in (x_flat, r_flat, z_flat))
        w1x, w1r, w1z, w2, w3, wh = (w.astype(jnp.bfloat16) for w in (w1x, w1r, w1z, w2, w3, wh))

    # Row tile: big tiles amortize the ~0.35us/grid-step pipeline overhead;
    # keep the sublane multiple (8 for f32, 16 for bf16) and prefer >= 2 grid
    # steps so v7x's two TensorCores both get work.
    sublane = 16 if use_bf16 else 8
    tm = max(sublane, min(int(tile_m), _round_up(M, sublane)))
    tm = _round_up(tm, sublane)
    if pl.cdiv(M, tm) < 2 and M > sublane:
        tm = _round_up(pl.cdiv(M, 2), sublane)
    grid = (pl.cdiv(M, tm),)   # partial last block handled by Pallas masking

    def row_spec(f):
        return pl.BlockSpec((tm, f), lambda i: (i, 0))

    def const2d(a):
        # Full-array block, constant index map -> stays VMEM-resident.
        return pl.BlockSpec(a.shape, lambda i: (0, 0))

    out = pl.pallas_call(
        functools.partial(decoder_kernel, y_dim, compute_dtype),
        out_shape=jax.ShapeDtypeStruct((M, 2 * y_dim), jnp.float32),
        grid=grid,
        in_specs=[
            row_spec(x_dim), row_spec(r_dim), row_spec(z_dim),
            const2d(w1x), const2d(w1r), const2d(w1z), const2d(b1),
            const2d(w2), const2d(b2),
            const2d(w3), const2d(b3),
            const2d(wh), const2d(bh),
        ],
        out_specs=pl.BlockSpec((tm, 2 * y_dim), lambda i: (i, 0)),
        compiler_params=pltpu.CompilerParams(
            dimension_semantics=("parallel",)),
    )(x_flat, r_flat, z_flat,
      w1x, w1r, w1z, b1,
      w2, b2, w3, b3,
      wh, bh)

    mu = out[:, :y_dim].reshape(B, N, y_dim)
    sigma = out[:, y_dim:].reshape(B, N, y_dim)
    return mu, sigma


def decoder_forward_ref(x, r, z, params):
    """Pure-JAX reference for correctness checking."""
    B, N, _ = x.shape
    z_rep = jnp.broadcast_to(z[:, None, :], (B, N, z.shape[-1]))
    inp = jnp.concatenate([x, r, z_rep], axis=-1).reshape(B * N, -1)
    h = jnp.maximum(inp @ params["w_l1"] + params["b_l1"], 0.0)
    h = jnp.maximum(h @ params["w_l2"] + params["b_l2"], 0.0)
    h = jnp.maximum(h @ params["w_l3"] + params["b_l3"], 0.0)
    mu = h @ params["w_mu"] + params["b_mu"]
    pre_sigma = h @ params["w_sigma"] + params["b_sigma"]
    sigma = 0.1 + 0.9 * jnp.logaddexp(pre_sigma, 0.0)
    y_dim = mu.shape[-1]
    return mu.reshape(B, N, y_dim), sigma.reshape(B, N, y_dim)


if __name__ == "__main__":
    # Small shapes consistent with the ANP decoder.
    x_dim, r_dim, z_dim, h_dim, y_dim = 3, 8, 8, 32, 2
    batch_size, num_points = 2, 8

    key = jax.random.PRNGKey(0)
    key, kx, kr, kz, kp = jax.random.split(key, 5)

    x = jax.random.normal(kx, (batch_size, num_points, x_dim), jnp.float32)
    r = jax.random.normal(kr, (batch_size, num_points, r_dim), jnp.float32)
    z = jax.random.normal(kz, (batch_size, z_dim), jnp.float32)

    params = init_decoder_params(kp, x_dim, r_dim, z_dim, h_dim, y_dim)

    # f32 path: must match the pure-JAX reference tightly.
    mu, sigma = decoder_forward(x, r, z, params)
    jax.block_until_ready((mu, sigma))

    mu_ref, sigma_ref = decoder_forward_ref(x, r, z, params)
    assert mu.shape == (batch_size, num_points, y_dim)
    assert sigma.shape == (batch_size, num_points, y_dim)
    assert jnp.allclose(mu, mu_ref, atol=1e-5, rtol=1e-5)
    assert jnp.allclose(sigma, sigma_ref, atol=1e-5, rtol=1e-5)
    assert bool(jnp.all(sigma > 0.1))  # sigma = 0.1 + 0.9*softplus(.) > 0.1

    # Optional bf16 compute path (v6e/v7x MXU): verify it runs and is finite.
    mu_bf, sigma_bf = decoder_forward(x, r, z, params, use_bf16=True)
    jax.block_until_ready((mu_bf, sigma_bf))
    assert mu_bf.shape == (batch_size, num_points, y_dim)
    assert bool(jnp.all(jnp.isfinite(mu_bf)))
    assert bool(jnp.all(jnp.isfinite(sigma_bf)))
    assert bool(jnp.all(sigma_bf > 0.1))

    # TODO(synk): torch.distributions.Normal object itself has no Pallas
    # equivalent; we return its parameters (mu, sigma) which fully define it.
    print("KERNEL_OK")
</pallas_src>

<mosaic_0001>
module attributes {stable_mosaic.version = 11 : i64} {
  func.func @decoder_kernel(%arg0: i32, %arg1: memref<8x3xf32, #tpu.memory_space<vmem>>, %arg2: memref<8x8xf32, #tpu.memory_space<vmem>>, %arg3: memref<8x8xf32, #tpu.memory_space<vmem>>, %arg4: memref<3x32xf32, #tpu.memory_space<vmem>>, %arg5: memref<8x32xf32, #tpu.memory_space<vmem>>, %arg6: memref<8x32xf32, #tpu.memory_space<vmem>>, %arg7: memref<1x32xf32, #tpu.memory_space<vmem>>, %arg8: memref<32x32xf32, #tpu.memory_space<vmem>>, %arg9: memref<1x32xf32, #tpu.memory_space<vmem>>, %arg10: memref<32x32xf32, #tpu.memory_space<vmem>>, %arg11: memref<1x32xf32, #tpu.memory_space<vmem>>, %arg12: memref<32x4xf32, #tpu.memory_space<vmem>>, %arg13: memref<1x4xf32, #tpu.memory_space<vmem>>, %arg14: memref<8x4xf32, #tpu.memory_space<vmem>>) attributes {dimension_semantics = [#tpu.dimension_semantics<parallel>], iteration_bounds = array<i64: 2>, scalar_prefetch = 0 : i64, scratch_operands = 0 : i64, tpu.core_type = #tpu.core_type<tc>, window_params = [{transform_indices = @transform_0, window_bounds = array<i64: 8, 3>}, {transform_indices = @transform_1, window_bounds = array<i64: 8, 8>}, {transform_indices = @transform_2, window_bounds = array<i64: 8, 8>}, {pipeline_mode = #tpu.pipeline_mode<synchronous>, transform_indices = @transform_3, window_bounds = array<i64: 3, 32>}, {pipeline_mode = #tpu.pipeline_mode<synchronous>, transform_indices = @transform_4, window_bounds = array<i64: 8, 32>}, {pipeline_mode = #tpu.pipeline_mode<synchronous>, transform_indices = @transform_5, window_bounds = array<i64: 8, 32>}, {pipeline_mode = #tpu.pipeline_mode<synchronous>, transform_indices = @transform_6, window_bounds = array<i64: 1, 32>}, {pipeline_mode = #tpu.pipeline_mode<synchronous>, transform_indices = @transform_7, window_bounds = array<i64: 32, 32>}, {pipeline_mode = #tpu.pipeline_mode<synchronous>, transform_indices = @transform_8, window_bounds = array<i64: 1, 32>}, {pipeline_mode = #tpu.pipeline_mode<synchronous>, transform_indices = @transform_9, window_bounds = array<i64: 32, 32>}, {pipeline_mode = #tpu.pipeline_mode<synchronous>, transform_indices = @transform_10, window_bounds = array<i64: 1, 32>}, {pipeline_mode = #tpu.pipeline_mode<synchronous>, transform_indices = @transform_11, window_bounds = array<i64: 32, 4>}, {pipeline_mode = #tpu.pipeline_mode<synchronous>, transform_indices = @transform_12, window_bounds = array<i64: 1, 4>}, {transform_indices = @transform_13, window_bounds = array<i64: 8, 4>}]} {
    %c0 = arith.constant 0 : index
    %c0_0 = arith.constant 0 : index
    %0 = vector.load %arg1[%c0, %c0_0] : memref<8x3xf32, #tpu.memory_space<vmem>>, vector<8x3xf32>
    %c0_1 = arith.constant 0 : index
    %c0_2 = arith.constant 0 : index
    %1 = vector.load %arg4[%c0_1, %c0_2] : memref<3x32xf32, #tpu.memory_space<vmem>>, vector<3x32xf32>
    %cst = arith.constant dense<0.000000e+00> : vector<8x32xf32>
    %2 = tpu.matmul %0, %1, %cst {dimension_numbers = #tpu.dot_dimension_numbers<[1], [0], [0], [1], [0, 0, 1, 1], [], []>} : vector<8x3xf32>, vector<3x32xf32>, vector<8x32xf32> -> vector<8x32xf32>
    %c0_3 = arith.constant 0 : index
    %c0_4 = arith.constant 0 : index
    %3 = vector.load %arg2[%c0_3, %c0_4] : memref<8x8xf32, #tpu.memory_space<vmem>>, vector<8x8xf32>
    %c0_5 = arith.constant 0 : index
    %c0_6 = arith.constant 0 : index
    %4 = vector.load %arg5[%c0_5, %c0_6] : memref<8x32xf32, #tpu.memory_space<vmem>>, vector<8x32xf32>
    %cst_7 = arith.constant dense<0.000000e+00> : vector<8x32xf32>
    %5 = tpu.matmul %3, %4, %cst_7 {dimension_numbers = #tpu.dot_dimension_numbers<[1], [0], [0], [1], [0, 0, 1, 1], [], []>} : vector<8x8xf32>, vector<8x32xf32>, vector<8x32xf32> -> vector<8x32xf32>
    %6 = arith.addf %2, %5 : vector<8x32xf32>
    %c0_8 = arith.constant 0 : index
    %c0_9 = arith.constant 0 : index
    %7 = vector.load %arg3[%c0_8, %c0_9] : memref<8x8xf32, #tpu.memory_space<vmem>>, vector<8x8xf32>
    %c0_10 = arith.constant 0 : index
    %c0_11 = arith.constant 0 : index
    %8 = vector.load %arg6[%c0_10, %c0_11] : memref<8x32xf32, #tpu.memory_space<vmem>>, vector<8x32xf32>
    %cst_12 = arith.constant dense<0.000000e+00> : vector<8x32xf32>
    %9 = tpu.matmul %7, %8, %cst_12 {dimension_numbers = #tpu.dot_dimension_numbers<[1], [0], [0], [1], [0, 0, 1, 1], [], []>} : vector<8x8xf32>, vector<8x32xf32>, vector<8x32xf32> -> vector<8x32xf32>
    %10 = arith.addf %6, %9 : vector<8x32xf32>
    %c0_13 = arith.constant 0 : index
    %c0_14 = arith.constant 0 : index
    %11 = vector.load %arg7[%c0_13, %c0_14] : memref<1x32xf32, #tpu.memory_space<vmem>>, vector<1x32xf32>
    %12 = vector.broadcast %11 : vector<1x32xf32> to vector<8x32xf32>
    %13 = arith.addf %10, %12 : vector<8x32xf32>
    %cst_15 = arith.constant 0.000000e+00 : f32
    %14 = vector.broadcast %cst_15 : f32 to vector<8x32xf32>
    %15 = arith.maximumf %13, %14 : vector<8x32xf32>
    %c0_16 = arith.constant 0 : index
    %c0_17 = arith.constant 0 : index
    %16 = vector.load %arg8[%c0_16, %c0_17] : memref<32x32xf32, #tpu.memory_space<vmem>>, vector<32x32xf32>
    %cst_18 = arith.constant dense<0.000000e+00> : vector<8x32xf32>
    %17 = tpu.matmul %15, %16, %cst_18 {dimension_numbers = #tpu.dot_dimension_numbers<[1], [0], [0], [1], [0, 0, 1, 1], [], []>} : vector<8x32xf32>, vector<32x32xf32>, vector<8x32xf32> -> vector<8x32xf32>
    %c0_19 = arith.constant 0 : index
    %c0_20 = arith.constant 0 : index
    %18 = vector.load %arg9[%c0_19, %c0_20] : memref<1x32xf32, #tpu.memory_space<vmem>>, vector<1x32xf32>
    %19 = vector.broadcast %18 : vector<1x32xf32> to vector<8x32xf32>
    %20 = arith.addf %17, %19 : vector<8x32xf32>
    %cst_21 = arith.constant 0.000000e+00 : f32
    %21 = vector.broadcast %cst_21 : f32 to vector<8x32xf32>
    %22 = arith.maximumf %20, %21 : vector<8x32xf32>
    %c0_22 = arith.constant 0 : index
    %c0_23 = arith.constant 0 : index
    %23 = vector.load %arg10[%c0_22, %c0_23] : memref<32x32xf32, #tpu.memory_space<vmem>>, vector<32x32xf32>
    %cst_24 = arith.constant dense<0.000000e+00> : vector<8x32xf32>
    %24 = tpu.matmul %22, %23, %cst_24 {dimension_numbers = #tpu.dot_dimension_numbers<[1], [0], [0], [1], [0, 0, 1, 1], [], []>} : vector<8x32xf32>, vector<32x32xf32>, vector<8x32xf32> -> vector<8x32xf32>
    %c0_25 = arith.constant 0 : index
    %c0_26 = arith.constant 0 : index
    %25 = vector.load %arg11[%c0_25, %c0_26] : memref<1x32xf32, #tpu.memory_space<vmem>>, vector<1x32xf32>
    %26 = vector.broadcast %25 : vector<1x32xf32> to vector<8x32xf32>
    %27 = arith.addf %24, %26 : vector<8x32xf32>
    %cst_27 = arith.constant 0.000000e+00 : f32
    %28 = vector.broadcast %cst_27 : f32 to vector<8x32xf32>
    %29 = arith.maximumf %27, %28 : vector<8x32xf32>
    %c0_28 = arith.constant 0 : index
    %c0_29 = arith.constant 0 : index
    %30 = vector.load %arg12[%c0_28, %c0_29] : memref<32x4xf32, #tpu.memory_space<vmem>>, vector<32x4xf32>
    %cst_30 = arith.constant dense<0.000000e+00> : vector<8x4xf32>
    %31 = tpu.matmul %29, %30, %cst_30 {dimension_numbers = #tpu.dot_dimension_numbers<[1], [0], [0], [1], [0, 0, 1, 1], [], []>} : vector<8x32xf32>, vector<32x4xf32>, vector<8x4xf32> -> vector<8x4xf32>
    %c0_31 = arith.constant 0 : index
    %c0_32 = arith.constant 0 : index
    %32 = vector.load %arg13[%c0_31, %c0_32] : memref<1x4xf32, #tpu.memory_space<vmem>>, vector<1x4xf32>
    %33 = vector.broadcast %32 : vector<1x4xf32> to vector<8x4xf32>
    %34 = arith.addf %31, %33 : vector<8x4xf32>
    %35 = tpu.iota {dimensions = array<i32: 1>} : vector<8x4xi32>
    %cst_33 = arith.constant 0.000000e+00 : f32
    %36 = vector.broadcast %cst_33 : f32 to vector<8x4xf32>
    %37 = arith.maximumf %34, %36 : vector<8x4xf32>
    %38 = vector.broadcast %cst_33 : f32 to vector<8x4xf32>
    %39 = arith.subf %34, %38 : vector<8x4xf32>
    %40 = arith.cmpf one, %39, %39 : vector<8x4xf32>
    %41 = vector.broadcast %cst_33 : f32 to vector<8x4xf32>
    %42 = arith.addf %34, %41 : vector<8x4xf32>
    %43 = math.absf %39 : vector<8x4xf32>
    %cst_34 = arith.constant 0.000000e+00 : f32
    %44 = vector.broadcast %cst_34 : f32 to vector<8x4xf32>
    %45 = arith.subf %44, %43 : vector<8x4xf32>
    %46 = math.exp %45 : vector<8x4xf32>
    %47 = math.log1p %46 : vector<8x4xf32>
    %48 = arith.addf %37, %47 : vector<8x4xf32>
    %49 = arith.select %40, %42, %48 : vector<8x4xi1>, vector<8x4xf32>
    %cst_35 = arith.constant 0.899999976 : f32
    %50 = vector.broadcast %cst_35 : f32 to vector<8x4xf32>
    %51 = arith.mulf %50, %49 : vector<8x4xf32>
    %cst_36 = arith.constant 1.000000e-01 : f32
    %52 = vector.broadcast %cst_36 : f32 to vector<8x4xf32>
    %53 = arith.addf %52, %51 : vector<8x4xf32>
    %c2_i32 = arith.constant 2 : i32
    %54 = vector.broadcast %c2_i32 : i32 to vector<8x4xi32>
    %55 = arith.cmpi sge, %35, %54 : vector<8x4xi32>
    %56 = arith.select %55, %53, %34 : vector<8x4xi1>, vector<8x4xf32>
    %c0_37 = arith.constant 0 : index
    %c0_38 = arith.constant 0 : index
    %57 = vector.load %arg14[%c0_37, %c0_38] : memref<8x4xf32, #tpu.memory_space<vmem>>, vector<8x4xf32>
    tpu.vector_store %arg14[%c0_37, %c0_38], %56 {strides = array<i32>} : memref<8x4xf32, #tpu.memory_space<vmem>>, vector<8x4xf32>,
    return
  }
  func.func @transform_0(%arg0: i32) -> (i32, i32) {
    %c0_i32 = arith.constant 0 : i32
    %c0_i32_0 = arith.constant 0 : i32
    return %arg0, %c0_i32 : i32, i32
  }
  func.func @transform_1(%arg0: i32) -> (i32, i32) {
    %c0_i32 = arith.constant 0 : i32
    %c0_i32_0 = arith.constant 0 : i32
    return %arg0, %c0_i32 : i32, i32
  }
  func.func @transform_2(%arg0: i32) -> (i32, i32) {
    %c0_i32 = arith.constant 0 : i32
    %c0_i32_0 = arith.constant 0 : i32
    return %arg0, %c0_i32 : i32, i32
  }
  func.func @transform_3(%arg0: i32) -> (i32, i32) {
    %c0_i32 = arith.constant 0 : i32
    %c0_i32_0 = arith.constant 0 : i32
    %c0_i32_1 = arith.constant 0 : i32
    return %c0_i32, %c0_i32_0 : i32, i32
  }
  func.func @transform_4(%arg0: i32) -> (i32, i32) {
    %c0_i32 = arith.constant 0 : i32
    %c0_i32_0 = arith.constant 0 : i32
    %c0_i32_1 = arith.constant 0 : i32
    return %c0_i32, %c0_i32_0 : i32, i32
  }
  func.func @transform_5(%arg0: i32) -> (i32, i32) {
    %c0_i32 = arith.constant 0 : i32
    %c0_i32_0 = arith.constant 0 : i32
    %c0_i32_1 = arith.constant 0 : i32
    return %c0_i32, %c0_i32_0 : i32, i32
  }
  func.func @transform_6(%arg0: i32) -> (i32, i32) {
    %c0_i32 = arith.constant 0 : i32
    %c0_i32_0 = arith.constant 0 : i32
    %c0_i32_1 = arith.constant 0 : i32
    return %c0_i32, %c0_i32_0 : i32, i32
  }
  func.func @transform_7(%arg0: i32) -> (i32, i32) {
    %c0_i32 = arith.constant 0 : i32
    %c0_i32_0 = arith.constant 0 : i32
    %c0_i32_1 = arith.constant 0 : i32
    return %c0_i32, %c0_i32_0 : i32, i32
  }
  func.func @transform_8(%arg0: i32) -> (i32, i32) {
    %c0_i32 = arith.constant 0 : i32
    %c0_i32_0 = arith.constant 0 : i32
    %c0_i32_1 = arith.constant 0 : i32
    return %c0_i32, %c0_i32_0 : i32, i32
  }
  func.func @transform_9(%arg0: i32) -> (i32, i32) {
    %c0_i32 = arith.constant 0 : i32
    %c0_i32_0 = arith.constant 0 : i32
    %c0_i32_1 = arith.constant 0 : i32
    return %c0_i32, %c0_i32_0 : i32, i32
  }
  func.func @transform_10(%arg0: i32) -> (i32, i32) {
    %c0_i32 = arith.constant 0 : i32
    %c0_i32_0 = arith.constant 0 : i32
    %c0_i32_1 = arith.constant 0 : i32
    return %c0_i32, %c0_i32_0 : i32, i32
  }
  func.func @transform_11(%arg0: i32) -> (i32, i32) {
    %c0_i32 = arith.constant 0 : i32
    %c0_i32_0 = arith.constant 0 : i32
    %c0_i32_1 = arith.constant 0 : i32
    return %c0_i32, %c0_i32_0 : i32, i32
  }
  func.func @transform_12(%arg0: i32) -> (i32, i32) {
    %c0_i32 = arith.constant 0 : i32
    %c0_i32_0 = arith.constant 0 : i32
    %c0_i32_1 = arith.constant 0 : i32
    return %c0_i32, %c0_i32_0 : i32, i32
  }
  func.func @transform_13(%arg0: i32) -> (i32, i32) {
    %c0_i32 = arith.constant 0 : i32
    %c0_i32_0 = arith.constant 0 : i32
    return %arg0, %c0_i32 : i32, i32
  }
}

</mosaic_0001>

<bundles_post_ra>
// kernel: decoder_forward.1
= control target key start
LH: loop header
LB: loop body
LE: loop exit
PB: predicated region body
PF: predicated region fallthrough
CT: control target
= control target key end

     0   :  { %s1254_s25 = smov 0   ;;  %s1370_s0 = inlined_call_operand.vmem [shape: f32[16,3], index: 0, kind: input, shape index: {}]   ;;  %s1371_s1 = inlined_call_operand.vmem [shape: f32[16,8], index: 1, kind: input, shape index: {}]   ;;  %s1372_s2 = inlined_call_operand.vmem [shape: f32[16,8], index: 2, kind: input, shape index: {}]   ;;  %s1373_s3 = inlined_call_operand.vmem [shape: f32[3,32], index: 3, kind: input, shape index: {}]   ;;  %s1374_s4 = inlined_call_operand.vmem [shape: f32[8,32], index: 4, kind: input, shape index: {}]   ;;  %s1375_s5 = inlined_call_operand.vmem [shape: f32[8,32], index: 5, kind: input, shape index: {}]   ;;  %s1376_s6 = inlined_call_operand.vmem [shape: f32[1,32], index: 6, kind: input, shape index: {}]   ;;  %s1377_s7 = inlined_call_operand.vmem [shape: f32[32,32], index: 7, kind: input, shape index: {}]   ;;  %s1378_s8 = inlined_call_operand.vmem [shape: f32[1,32], index: 8, kind: input, shape index: {}]   ;;  %s1379_s9 = inlined_call_operand.vmem [shape: f32[32,32], index: 9, kind: input, shape index: {}]   ;;  %s1380_s10 = inlined_call_operand.vmem [shape: f32[1,32], index: 10, kind: input, shape index: {}]   ;;  %s1381_s11 = inlined_call_operand.vmem [shape: f32[32,4], index: 11, kind: input, shape index: {}]   ;;  %s1382_s12 = inlined_call_operand.vmem [shape: f32[1,4], index: 12, kind: input, shape index: {}]   ;;  %s1383_s13 = inlined_call_operand.vmem [shape: f32[16,4], index: 13, kind: output, shape index: {}]  }
   0x1 LB: > { %s1069_s26 = sadd.s32 4294967295, %s1180_s25   ;;  %p1073_p0 = scmp.ge.s32.totalorder %s1180_s25, 1  ;;  %s1180_s25 = sphi %s1254_s25, %s23_s25  }
   0x2   : > { %p404_p1 = scmp.lt.s32.totalorder %s1180_s25, 3 }
   0x4   : > { %p405_p2 = pnand %p1073_p0, %p404_p1 }
   0x5   : > { %p454_p3 = scmp.lt.s32.totalorder (!%p405_p2), %s1069_s26, 1 }
   0x6   : > { %408 = sbr.rel (%p405_p2) target bundleno = 856 (0x358), region = 72 }
   0xb   : > { %v473_v0 = vld [vmem:[%s1374_s4] sm:$0xff]  ;;  %vm552_vm0 = vcmask 1042432   ;;  %v1182_v2 = vmov 0.0   ;;  %vm1183_vm1 = vmmov 0   ;;  %s1385_s26 = smov (!%p454_p3, %s1069_s26), 1  ;;  %vm474_vm2 = vcmask 64512  }
   0xc   : > { %v471_v1 = vld [vmem:[%s1373_s3] sm:$0x7]  ;;  %1112 = vmatprep.subr.mxu0 %v1182_v2  ;;  %1117 = vmatprep.subr.mxu1 %v1182_v2  ;;  %s1276_s14 = sshll.u32 %s1385_s26, 3  ;;  %vm548_vm3 = vcmask 23552   ;;  %v714_v7 = vld [vmem:[%s1377_s7 + $0x18] sm:$0xff]  ;;  %v713_v8 = vld [vmem:[%s1377_s7 + $0x10] sm:$0xff]  ;;  %v966_v53 = vlaneseq }
   0xd   : > { %1113 = vmatpush3.msra.mxu0 %v473_v0  ;;  %1114 = vmatprep.mubr.msk.f32.mxu0 %vm1183_vm1, %v1182_v2  ;;  %s461_s17 = scalar_lea.vmem %s1371_s1, %s1276_s14  ;;  %v627_v3 = vld [vmem:[%s1375_s5] sm:$0xff]  ;;  %s457_s22 = scalar_lea.vmem %s1370_s0, %s1276_s14  ;;  %v712_v9 = vld [vmem:[%s1377_s7 + $0x8] sm:$0xff]  ;;  %v800_v11 = vld [vmem:[%s1379_s9 + $0x18] sm:$0xff]  ;;  %vm722_vm4 = vcmask 261120   ;;  %vm990_vm8 = vcmask 31744  }
   0xe   : > { %1118 = vmatpush3.msk.msra.mxu1 %vm552_vm0, %v471_v1  ;;  %1119 = vmatprep.mubr.msk.f32.mxu1 %vm1183_vm1, %v1182_v2  ;;  %v472_v4 = vld [vmem:[%s461_s17] sm:$0xff]  ;;  %s465_s26 = scalar_lea.vmem %s1372_s2, %s1276_s14  ;;  %v799_v23 = vld [vmem:[%s1379_s9 + $0x10] sm:$0xff]  ;;  %v798_v24 = vld [vmem:[%s1379_s9 + $0x8] sm:$0xff]  ;;  %v967_v58 = vand.u32 127, %v966_v53  ;;  %s469_s15 = scalar_lea.vmem %s1383_s13, %s1276_s14 }
   0xf   : > { %1122 = vmatprep.subr.mxu0 %v1182_v2  ;;  %1127 = vmatprep.subr.mxu1 %v1182_v2  ;;  %v470_v5 = vld [vmem:[%s457_s22] sm:$0xff]  ;;  %v885_v26 = vld [vmem:[%s1381_s11 + $0x18] sm:$0xff]  ;;  %v884_v32 = vld [vmem:[%s1381_s11 + $0x10] sm:$0xff] }
  0x10   : > { %1115 = vmatmul.mubr.msk.f32.vlgmr.msra.gmra.mxu0 %vm474_vm2, %v472_v4  ;;  %1120 = vmatmul.mubr.msk.f32.vlgmr.msra.gmra.mxu1 %vm548_vm3, %v470_v5  ;;  %v626_v6 = vld [vmem:[%s465_s26] sm:$0xff]  ;;  %v883_v33 = vld [vmem:[%s1381_s11 + $0x8] sm:$0xff]  ;;  %vm988_vm7 = vcmp.ge.s32.totalorder %v967_v58, 2 }
  0x11   : > { %1123 = vmatpush3.msra.mxu0 %v627_v3  ;;  %1124 = vmatprep.mubr.msk.f32.mxu0 %vm1183_vm1, %v1182_v2  ;;  %v711_v10 = vld [vmem:[%s1377_s7] sm:$0xff] }
  0x12   : > { %1135 = vmatprep.mubr.msk.f32.mxu1 %vm1183_vm1, %v1182_v2  ;;  %1138 = vmatprep.subr.mxu0 %v1182_v2  ;;  %v1082_v18 = vld [vmem:[%s1376_s6] ss:$0 sm:$0xff] }
  0x13   : > { %1128 = vmatpush3.msra.mxu1 %v714_v7  ;;  %v797_v25 = vld [vmem:[%s1379_s9] sm:$0xff] }
  0x14   : > { %1125 = vmatmul.mubr.msk.f32.vlgmr.msra.gmra.mxu0 %vm474_vm2, %v626_v6  ;;  %1129 = vmatprep.subr.mxu1 %v1182_v2  ;;  %v1083_v27 = vld [vmem:[%s1378_s8] ss:$0 sm:$0xff] }
  0x15   : > { %1146 = vmatprep.mubr.msk.f32.mxu0 %vm1183_vm1, %v1182_v2  ;;  %1130 = vmatpush3.msra.mxu1 %v713_v8  ;;  %v882_v34 = vld [vmem:[%s1381_s11] sm:$0xff] }
  0x16   : > { %1131 = vmatprep.subr.mxu1 %v1182_v2  ;;  %1139 = vmatpush3.msra.mxu0 %v800_v11  ;;  %v1085_v35 = vld [vmem:[%s1380_s10] ss:$0 sm:$0xff] }
  0x17   : > { %1132 = vmatpush3.msra.mxu1 %v712_v9  ;;  %1140 = vmatprep.subr.mxu0 %v1182_v2  ;;  %v1087_v40 = vld [vmem:[%s1382_s12] ss:$0 sm:$0xff] }
  0x18   : > { %1133 = vmatprep.subr.mxu1 %v1182_v2  ;;  %1141 = vmatpush3.msra.mxu0 %v799_v23 }
  0x19   : > { %1134 = vmatpush3.msra.mxu1 %v711_v10  ;;  %1142 = vmatprep.subr.mxu0 %v1182_v2 }
  0x1a   : > { %1149 = vmatprep.subr.mxu1 %v1182_v2  ;;  %1143 = vmatpush3.msra.mxu0 %v798_v24 }
  0x1b   : > { %1144 = vmatprep.subr.mxu0 %v1182_v2 }
  0x1c   : > { %1145 = vmatpush3.msra.mxu0 %v797_v25 }
  0xd0   : > { %v544_v12 = vpop.f32.mrf.mxu0  ;;  %v622_v13 = vpop.f32.mrf.mxu1 }
  0xd1   : > { %v623_v15 = vadd.f32 %v622_v13, %v544_v12 }
  0xd2   : > { %v1116_v14 = vpop.f32.mrf.mxu0  ;;  %v1121_v16 = vpop.f32.mrf.mxu1 }
  0xd4   : > { %v697_v17 = vpop.f32.mrf.mxu0 }
  0xd5   : > { %v701_v19 = vadd.f32 %v697_v17, %v623_v15 }
  0xd6   : > { %v1126_v20 = vpop.f32.mrf.mxu0 }
  0xd7   : > { %v709_v21 = vadd.f32 %v1082_v18, %v701_v19 }
  0xd9   : > { %v710_v22 = vmax.f32 %v709_v21, 0.0 }
  0xdb   : > { %1136 = vmatmul.mubr.msk.f32.vlgmr.msra.gmra.mxu1 %vm722_vm4, %v710_v22 }
  0xdc   : > { %1157 = vmatprep.mubr.msk.f32.mxu1 %vm1183_vm1, %v1182_v2  ;;  %1150 = vmatpush3.msra.mxu1 %v885_v26 }
  0xdd   : > { %1151 = vmatprep.subr.mxu1 %v1182_v2 }
  0xde   : > { %1152 = vmatpush3.msra.mxu1 %v884_v32 }
  0xdf   : > { %1153 = vmatprep.subr.mxu1 %v1182_v2 }
  0xe0   : > { %1154 = vmatpush3.msra.mxu1 %v883_v33 }
  0xe1   : > { %1155 = vmatprep.subr.mxu1 %v1182_v2 }
  0xe2   : > { %1156 = vmatpush3.msra.mxu1 %v882_v34 }
 0x19b   : > { %v792_v28 = vpop.f32.mrf.mxu1 }
 0x19c   : > { %v793_v29 = vadd.f32 %v1083_v27, %v792_v28 }
 0x19d   : > { %v1137_v30 = vpop.f32.mrf.mxu1 }
 0x19e   : > { %v796_v31 = vmax.f32 %v793_v29, 0.0 }
 0x1a0   : > { %1147 = vmatmul.mubr.msk.f32.vlgmr.msra.gmra.mxu0 %vm722_vm4, %v796_v31 }
 0x260   : > { %v877_v36 = vpop.f32.mrf.mxu0 }
 0x261   : > { %v878_v37 = vadd.f32 %v1085_v35, %v877_v36 }
 0x262   : > { %v1148_v38 = vpop.f32.mrf.mxu0 }
 0x263   : > { %v881_v39 = vmax.f32 %v878_v37, 0.0 }
 0x265   : > { %1158 = vmatmul.mubr.msk.f32.vlgmr.msra.gmra.mxu1 %vm722_vm4, %v881_v39 }
 0x325   : > { %v962_v41 = vpop.f32.mrf.mxu1 }
 0x326   : > { %v963_v42 = vadd.f32 %v1087_v40, %v962_v41 }
 0x327   : > { %v1159_v43 = vpop.f32.mrf.mxu1 }
 0x328   : > { %v971_v44 = vand.u32 2147483647, %v963_v42  ;;  %v968_v56 = vmax.f32 %v963_v42, 0.0  ;;  %vm969_vm6 = vcmp.ne.f32.partialorder %v963_v42, %v963_v42 }
 0x32a   : > { %v972_v45 = vsub.f32 0.0, %v971_v44 }
 0x32c   : > { %v973_v46 = vmul.f32 1.442695, %v972_v45 }
 0x32e   : > { %1170 = vpow2.f32 %v973_v46 }
 0x33b   : > { %v1171_v47 = vpop.eup %1170 }
 0x33c   : > { %v975_v48 = vadd.f32 1.0, %v1171_v47  ;;  %v978_v49 = vmul.f32 -0.5, %v1171_v47  ;;  %v981_v51 = vand.u32 2147483647, %v1171_v47 }
 0x33e   : > { %1172 = vlog2.f32 %v975_v48  ;;  %v979_v50 = vadd.f32 1.0, %v978_v49  ;;  %vm982_vm5 = vcmp.lt.f32.partialorder %v981_v51, 0.0004427343 }
 0x340   : > { %v980_v55 = vmul.f32 %v1171_v47, %v979_v50 }
 0x34b   : > { %v1173_v52 = vpop.eup %1172 }
 0x34c   : > { %v977_v54 = vmul.f32 0.6931472, %v1173_v52 }
 0x34e   : > { %v983_v57 = vsel %vm982_vm5, %v980_v55, %v977_v54 }
 0x34f   : > { %v984_v59 = vadd.f32 %v983_v57, %v968_v56 }
 0x351   : > { %v985_v60 = vsel %vm969_vm6, %v963_v42, %v984_v59 }
 0x352   : > { %v986_v61 = vmul.f32 0.9, %v985_v60 }
 0x354   : > { %v987_v62 = vadd.f32 0.1, %v986_v61 }
 0x356   : > { %v989_v63 = vsel %vm988_vm7, %v987_v62, %v963_v42 }
 0x357   : > { %991 = vst.msk [vmem:[%s469_s15] sm:$0xff] %vm990_vm8, %v989_v63 }
 0x358 PF: > { %s23_s25 = sadd.s32 1, %s1180_s25  }
 0x359   : > { %p20_p4 = scmp.ge.s32.totalorder %s23_s25, 4  }
 0x35b   :  { %22 = sbr.rel (!%p20_p4) target bundleno = 1 (0x1), region = 108 }

</bundles_post_ra>
